<compile_context>
chip_gen: v5e
topology: v5e:2x2
jax: 0.10.0
libtpu: 0.0.40
codegen_flags: <defaults>
</compile_context>

<pallas_src>
import functools

import jax
import jax.numpy as jnp
from jax.experimental import pallas as pl
from jax.experimental.pallas import tpu as pltpu

_SUBLANES = 8
_LANES = 128
_CHUNK_ELEMS = _SUBLANES * _LANES  # 1024 elements per (8, 128) chunk


def _rmse_partial_kernel(yhat_ref, y_ref, o_ref, *, chunk_block, num_chunks,
                         steps_per_core, total_steps):
    c = pl.program_id(0)           # partial-sum slot ("parallel" axis)
    i = pl.program_id(1)           # reduction step ("arbitrary" axis)
    step = c * steps_per_core + i  # global block index along the chunk axis

    # o_ref maps to the same output block for every i, so it stays resident in
    # VMEM across the whole reduction sweep and is written back to HBM once.
    @pl.when(i == 0)
    def _init():
        o_ref[...] = jnp.zeros_like(o_ref)

    # Skip the (at most one) overflow step when total_steps does not split
    # evenly across cores; its input block index is clamped in the index_map
    # so no out-of-bounds DMA is ever issued.
    @pl.when(step < total_steps)
    def _accumulate():
        d = yhat_ref[...].astype(jnp.float32) - y_ref[...].astype(jnp.float32)
        sq = d * d
        if num_chunks % chunk_block != 0:
            # Mask out-of-range chunks of the partial last block (their
            # contents are unspecified).
            local = jax.lax.broadcasted_iota(jnp.int32, sq.shape, 0)
            valid = (step * chunk_block + local) < num_chunks
            sq = jnp.where(valid, sq, 0.0)
        # Reduce only over the leading (untiled) axis: elementwise vreg adds
        # on the VPU that hide under the DMA. The cross-lane/sublane reduce
        # happens exactly once, in the wrapper.
        o_ref[...] += jnp.sum(sq, axis=0)


def rmse_loss(yhat, y, *, chunk_block=256, num_cores=2):
    """sqrt(mean((yhat - y)**2)) over all elements."""
    assert yhat.shape == y.shape, "yhat and y must have the same shape"
    total = yhat.size

    flat_yhat = yhat.reshape(-1)
    flat_y = y.reshape(-1)
    # Pad (only when needed) to a whole number of (8, 128) chunks. Both sides
    # are padded with zeros, so the padding contributes 0 to the sum of
    # squared differences. For typical shapes total % 1024 == 0 -> no-op.
    pad = (-total) % _CHUNK_ELEMS
    if pad:
        flat_yhat = jnp.pad(flat_yhat, (0, pad))
        flat_y = jnp.pad(flat_y, (0, pad))
    num_chunks = flat_yhat.size // _CHUNK_ELEMS
    yhat3d = flat_yhat.reshape(num_chunks, _SUBLANES, _LANES)
    y3d = flat_y.reshape(num_chunks, _SUBLANES, _LANES)

    # Tile: chunk_block chunks = chunk_block * 4 KiB per input per buffer.
    # Default 256 -> 1 MiB blocks, ~4 MiB live with double-buffered inputs:
    # safe under the default scoped-VMEM limits on v5e / v6e / v7x.
    cb = max(1, min(chunk_block, num_chunks))
    total_steps = pl.cdiv(num_chunks, cb)
    cores = num_cores if total_steps >= num_cores else 1
    steps_per_core = pl.cdiv(total_steps, cores)
    last_block = total_steps - 1

    def in_index_map(c, i):
        # Clamp the (at most one) overflow step to the last real block so the
        # DMA never reads past the end of the array; its compute is skipped.
        return (jnp.minimum(c * steps_per_core + i, last_block), 0, 0)

    partials = pl.pallas_call(
        functools.partial(
            _rmse_partial_kernel,
            chunk_block=cb,
            num_chunks=num_chunks,
            steps_per_core=steps_per_core,
            total_steps=total_steps,
        ),
        out_shape=jax.ShapeDtypeStruct((cores, _SUBLANES, _LANES), jnp.float32),
        grid=(cores, steps_per_core),
        in_specs=[
            pl.BlockSpec((cb, _SUBLANES, _LANES), in_index_map),
            pl.BlockSpec((cb, _SUBLANES, _LANES), in_index_map),
        ],
        # Lane-dense per-core partial sums; leading dim squeezed in-kernel.
        out_specs=pl.BlockSpec((None, _SUBLANES, _LANES),
                               lambda c, i: (c, 0, 0)),
        compiler_params=pltpu.CompilerParams(
            dimension_semantics=("parallel", "arbitrary")
        ),
    )(yhat3d, y3d)

    # Final tiny cross-lane reduce + mean + sqrt in plain JAX.
    return jnp.sqrt(jnp.sum(partials) / jnp.float32(total))


if __name__ == "__main__":
    key = jax.random.PRNGKey(0)
    k1, k2, k3, k4, k5, k6 = jax.random.split(key, 6)

    # Small NCHW tensors mirroring the PyTorch module's usage.
    yhat = jax.random.normal(k1, (2, 4, 16, 16), dtype=jnp.float32)
    y = jax.random.normal(k2, (2, 4, 16, 16), dtype=jnp.float32)
    out = jax.block_until_ready(rmse_loss(yhat, y))
    ref = jnp.sqrt(jnp.mean((yhat - y) ** 2))
    assert jnp.allclose(out, ref, rtol=1e-5, atol=1e-6), (out, ref)

    # Exercise multi-step reduction, two partial-sum slots, the clamped
    # overflow step, and the tail-block mask (32 chunks, block of 5 chunks).
    yhat2 = jax.random.normal(k3, (4, 8, 32, 32), dtype=jnp.float32)
    y2 = jax.random.normal(k4, (4, 8, 32, 32), dtype=jnp.float32)
    out2 = jax.block_until_ready(rmse_loss(yhat2, y2, chunk_block=5))
    ref2 = jnp.sqrt(jnp.mean((yhat2 - y2) ** 2))
    assert jnp.allclose(out2, ref2, rtol=1e-5, atol=1e-6), (out2, ref2)

    # Exercise the (rare) non-multiple-of-1024 element count path.
    yhat3 = jax.random.normal(k5, (2, 3, 20, 20), dtype=jnp.float32)
    y3 = jax.random.normal(k6, (2, 3, 20, 20), dtype=jnp.float32)
    out3 = jax.block_until_ready(rmse_loss(yhat3, y3))
    ref3 = jnp.sqrt(jnp.mean((yhat3 - y3) ** 2))
    assert jnp.allclose(out3, ref3, rtol=1e-5, atol=1e-6), (out3, ref3)

    print("KERNEL_OK")
</pallas_src>

<mosaic_0001>
module attributes {stable_mosaic.version = 11 : i64} {
  func.func @_rmse_partial_kernel(%arg0: i32, %arg1: i32, %arg2: memref<2x8x128xf32, #tpu.memory_space<vmem>>, %arg3: memref<2x8x128xf32, #tpu.memory_space<vmem>>, %arg4: memref<1x8x128xf32, #tpu.memory_space<vmem>>) attributes {dimension_semantics = [#tpu.dimension_semantics<parallel>, #tpu.dimension_semantics<arbitrary>], iteration_bounds = array<i64: 1, 1>, scalar_prefetch = 0 : i64, scratch_operands = 0 : i64, tpu.core_type = #tpu.core_type<tc>, window_params = [{transform_indices = @transform_0, window_bounds = array<i64: 2, 8, 128>}, {transform_indices = @transform_1, window_bounds = array<i64: 2, 8, 128>}, {transform_indices = @transform_2, window_bounds = array<i64: 1, 8, 128>}]} {
    %c1_i32 = arith.constant 1 : i32
    %0 = arith.muli %arg0, %c1_i32 : i32
    %1 = arith.addi %0, %arg1 : i32
    %c0_i32 = arith.constant 0 : i32
    %2 = arith.cmpi eq, %arg1, %c0_i32 : i32
    %3 = arith.extui %2 : i1 to i32
    %c0_i32_0 = arith.constant 0 : i32
    %4 = arith.cmpi ne, %3, %c0_i32_0 : i32
    scf.if %4 {
      %cst = arith.constant 0.000000e+00 : f32
      %8 = vector.broadcast %cst : f32 to vector<8x128xf32>
      %c0 = arith.constant 0 : index
      %c0_3 = arith.constant 0 : index
      %c0_4 = arith.constant 0 : index
      %9 = vector.load %arg4[%c0, %c0_3, %c0_4] : memref<1x8x128xf32, #tpu.memory_space<vmem>>, vector<1x8x128xf32>
      %10 = vector.shape_cast %9 : vector<1x8x128xf32> to vector<8x128xf32>
      %11 = vector.shape_cast %8 : vector<8x128xf32> to vector<1x8x128xf32>
      tpu.vector_store %arg4[%c0, %c0_3, %c0_4], %11 {strides = array<i32>} : memref<1x8x128xf32, #tpu.memory_space<vmem>>, vector<1x8x128xf32>,
    } else {
    }
    %c1_i32_1 = arith.constant 1 : i32
    %5 = arith.cmpi slt, %1, %c1_i32_1 : i32
    %6 = arith.extui %5 : i1 to i32
    %c0_i32_2 = arith.constant 0 : i32
    %7 = arith.cmpi ne, %6, %c0_i32_2 : i32
    scf.if %7 {
      %c0 = arith.constant 0 : index
      %c0_3 = arith.constant 0 : index
      %c0_4 = arith.constant 0 : index
      %8 = vector.load %arg2[%c0, %c0_3, %c0_4] : memref<2x8x128xf32, #tpu.memory_space<vmem>>, vector<2x8x128xf32>
      %c0_5 = arith.constant 0 : index
      %c0_6 = arith.constant 0 : index
      %c0_7 = arith.constant 0 : index
      %9 = vector.load %arg3[%c0_5, %c0_6, %c0_7] : memref<2x8x128xf32, #tpu.memory_space<vmem>>, vector<2x8x128xf32>
      %10 = arith.subf %8, %9 : vector<2x8x128xf32>
      %11 = arith.mulf %10, %10 : vector<2x8x128xf32>
      %c0_8 = arith.constant 0 : index
      %c0_9 = arith.constant 0 : index
      %c0_10 = arith.constant 0 : index
      %12 = vector.load %arg4[%c0_8, %c0_9, %c0_10] : memref<1x8x128xf32, #tpu.memory_space<vmem>>, vector<1x8x128xf32>
      %13 = vector.shape_cast %12 : vector<1x8x128xf32> to vector<8x128xf32>
      %cst = arith.constant dense<0.000000e+00> : vector<8x128xf32>
      %14 = vector.multi_reduction <add>, %11, %cst [0] : vector<2x8x128xf32> to vector<8x128xf32>
      %15 = arith.addf %13, %14 : vector<8x128xf32>
      %c0_11 = arith.constant 0 : index
      %c0_12 = arith.constant 0 : index
      %c0_13 = arith.constant 0 : index
      %16 = vector.load %arg4[%c0_11, %c0_12, %c0_13] : memref<1x8x128xf32, #tpu.memory_space<vmem>>, vector<1x8x128xf32>
      %17 = vector.shape_cast %16 : vector<1x8x128xf32> to vector<8x128xf32>
      %18 = vector.shape_cast %15 : vector<8x128xf32> to vector<1x8x128xf32>
      tpu.vector_store %arg4[%c0_11, %c0_12, %c0_13], %18 {strides = array<i32>} : memref<1x8x128xf32, #tpu.memory_space<vmem>>, vector<1x8x128xf32>,
    } else {
    }
    return
  }
  func.func @transform_0(%arg0: i32, %arg1: i32) -> (i32, i32, i32) {
    %c1_i32 = arith.constant 1 : i32
    %0 = arith.muli %arg0, %c1_i32 : i32
    %1 = arith.addi %0, %arg1 : i32
    %c0_i32 = arith.constant 0 : i32
    %2 = arith.minsi %1, %c0_i32 : i32
    %c0_i32_0 = arith.constant 0 : i32
    %c0_i32_1 = arith.constant 0 : i32
    %c0_i32_2 = arith.constant 0 : i32
    return %2, %c0_i32_0, %c0_i32_1 : i32, i32, i32
  }
  func.func @transform_1(%arg0: i32, %arg1: i32) -> (i32, i32, i32) {
    %c1_i32 = arith.constant 1 : i32
    %0 = arith.muli %arg0, %c1_i32 : i32
    %1 = arith.addi %0, %arg1 : i32
    %c0_i32 = arith.constant 0 : i32
    %2 = arith.minsi %1, %c0_i32 : i32
    %c0_i32_0 = arith.constant 0 : i32
    %c0_i32_1 = arith.constant 0 : i32
    %c0_i32_2 = arith.constant 0 : i32
    return %2, %c0_i32_0, %c0_i32_1 : i32, i32, i32
  }
  func.func @transform_2(%arg0: i32, %arg1: i32) -> (i32, i32, i32) {
    %c0_i32 = arith.constant 0 : i32
    %c0_i32_0 = arith.constant 0 : i32
    %c0_i32_1 = arith.constant 0 : i32
    return %arg0, %c0_i32, %c0_i32_0 : i32, i32, i32
  }
}

</mosaic_0001>

<bundles_post_ra>
// kernel: tpu_custom_call.1
= control target key start
LH: loop header
LB: loop body
LE: loop exit
PB: predicated region body
PF: predicated region fallthrough
CT: control target
= control target key end

     0   :  { %7 = vsyncpa [#allocation3], 0  ;;  %s221_s0 = inlined_call_operand.hbm [shape: f32[2,8,128], index: 0, kind: input, shape index: {}]   ;;  %s222_s1 = inlined_call_operand.hbm [shape: f32[2,8,128], index: 1, kind: input, shape index: {}]   ;;  %s223_s2 = inlined_call_operand.hbm [shape: f32[1,8,128], index: 2, kind: output, shape index: {}]  }
   0x1   :  { %8 = vsyncpa [#allocation6], 0 }
   0x2   :  { %9 = vsyncpa [#allocation4], 0  ;;  %s20_s11 = sshll.u32 %s221_s0, 4  ;;  %s192_s12 = smov [#allocation2]   ;;  %s21_s11 = int_to_ptr.hbm [resolvable:$true] %s20_s11 }
   0x3   :  { %s22_s13 = sshll.u32 %s192_s12, 4  ;;  %s39_s16 = sshll.u32 %s222_s1, 4  ;;  %s23_s13 = int_to_ptr.vmem [resolvable:$true] %s22_s13  ;;  %s40_s16 = int_to_ptr.hbm [resolvable:$true] %s39_s16 }
   0x4   :  { %s193_s17 = smov 128   ;;  %s194_s18 = smov 8  }
   0x5   :  { %28 = dma.hbm_to_vmem [thread:$0]  %s21_s11, 256, %s23_s13, [#allocation3], %s193_s17, %s193_s17, %s194_s18  }
   0x6   :  { %s195_s19 = smov [#allocation5]  }
   0x7   :  { %s41_s20 = sshll.u32 %s195_s19, 4  ;;  %s42_s20 = int_to_ptr.vmem [resolvable:$true] %s41_s20 }
   0x8   :  { %47 = dma.hbm_to_vmem [thread:$0]  %s40_s16, 256, %s42_s20, [#allocation6], %s193_s17, %s193_s17, %s194_s18  }
   0x9   :  { %186 = dma.done.wait [#allocation3], 256  }
   0xa   :  { %187 = vsyncadd [#allocation3], 4294967040 }
   0xb   :  { %188 = dma.done.wait [#allocation6], 256  }
   0xc   :  { %189 = vsyncadd [#allocation6], 4294967040  ;;  %v74_v0 = vld [vmem:[#allocation2] sm:$0xff]  ;;  %v75_v1 = vld [vmem:[#allocation2 + $0x8] sm:$0xff]  ;;  %s196_s0 = smov [#allocation7]   ;;  %s93_s23 = sshll.u32 %s223_s2, 4  ;;  %s94_s23 = int_to_ptr.hbm [resolvable:$true] %s93_s23 }
   0xd   :  { %v76_v2 = vld [vmem:[#allocation5] sm:$0xff]  ;;  %v77_v3 = vld [vmem:[#allocation5 + $0x8] sm:$0xff]  ;;  %s91_s1 = sshll.u32 %s196_s0, 4  ;;  %s92_s1 = int_to_ptr.vmem [resolvable:$true] %s91_s1 }
   0xe   :  { %v78_v4 = vsub.f32 %v74_v0, %v76_v2  ;;  %v79_v5 = vsub.f32 %v75_v1, %v77_v3 }
  0x10   :  { %v80_v6 = vmul.f32 %v78_v4, %v78_v4  ;;  %v81_v7 = vmul.f32 %v79_v5, %v79_v5 }
  0x12   :  { %v83_v8 = vadd.f32 %v81_v7, %v80_v6 }
  0x14   :  { %85 = vst [vmem:[#allocation7] sm:$0xff] %v83_v8 }
  0x15   :  { %96 = dma.vmem_to_hbm [thread:$0]  %s92_s1, 128, %s94_s23, [#allocation4]  }
  0x16   :  { %190 = dma.done.wait [#allocation4], 128  }
  0x17   :  { %191 = vsyncadd [#allocation4], 4294967168 }
  0x18   :  { %101 = vsyncpa [#allocation3], 1 }
  0x19   :  { %102 = vsyncpa [#allocation6], 1 }
  0x1a   :  { %103 = vsyncpa [#allocation4], 1 }

</bundles_post_ra>
